<compile_context>
chip_gen: v6e
topology: v6e:2x2x1
jax: 0.10.0
libtpu: 0.0.40
codegen_flags: <defaults>
</compile_context>

<pallas_src>
import functools

import jax
import jax.numpy as jnp
from jax.experimental import pallas as pl
from jax.experimental.pallas import tpu as pltpu


def _upsample_conv_kernel(x_ref, w_ref, b_ref, o_ref, *, C, H, W):
    # x_ref: (1, C, H*W)     source, spatial flattened (lane-dense)
    # w_ref: (4, C, 4*C)     folded per-phase weights [(py,px), c_out, (dyi,dxi,c_in)]
    # b_ref: (C, 1)          bias
    # o_ref: (1, 4, C, H*W)  phase-major output (de-interleaved in the wrapper)
    HW = H * W
    f32 = jnp.float32
    x = x_ref[0].astype(f32)                                   # (C, HW)

    # Flat-index helpers for the shift masks (flat = sy*W + sx).
    lane = jax.lax.broadcasted_iota(jnp.int32, (C, HW), 1)
    sx = lane % W
    row_ok = {-1: lane >= W, 0: None, 1: lane < (H - 1) * W}
    col_ok = {-1: sx >= 1, 0: None, 1: sx < (W - 1)}

    def shifted(dy, dx):
        # shifted[c, sy*W+sx] = x[c, (sy+dy)*W + (sx+dx)], zero outside the image.
        s = dy * W + dx
        v = x if s == 0 else pltpu.roll(x, (-s) % HW, axis=1)  # XLU rotate
        keep = None
        for m in (row_ok[dy], col_ok[dx]):
            if m is not None:
                keep = m if keep is None else jnp.logical_and(keep, m)
        return v if keep is None else jnp.where(keep, v, 0.0)

    # The 9 distinct shifted source maps, built once and shared by all 4 phases.
    smaps = {(dy, dx): shifted(dy, dx)
             for dy in (-1, 0, 1) for dx in (-1, 0, 1)}

    b = b_ref[...]                                             # (C, 1)
    for p in range(4):                                         # phase = (oy%2, ox%2)
        py, px = p // 2, p % 2
        # Each phase needs only source offsets dy in {py-1, py}, dx in {px-1, px}.
        a = jnp.concatenate(
            [smaps[(py - 1 + dyi, px - 1 + dxi)]
             for dyi in (0, 1) for dxi in (0, 1)], axis=0)     # (4C, HW)
        acc = jnp.dot(w_ref[p], a, preferred_element_type=f32) + b   # MXU, (C, HW)
        o_ref[0, p] = acc.astype(o_ref.dtype)                  # lane-dense store


def _upsample_only_kernel(x_ref, o_ref):
    # Nearest-2x only: every phase is an exact copy of the source map.
    x = x_ref[0]
    for p in range(4):
        o_ref[0, p] = x.astype(o_ref.dtype)


def upsample_forward(x, weight=None, bias=None, *, with_conv=True):
    """x: (N, C, H, W); weight: (C, C, 3, 3) [OIHW, PyTorch]; bias: (C,)."""
    N, C, H, W = x.shape
    HW = H * W
    x_flat = x.reshape(N, C, HW)                               # free reshape

    if with_conv:
        # Fold 3x3 taps into per-phase 2x2 taps: output row oy = 2*sy + py reads
        # source row sy + floor((py - 1 + ky)/2); S[p][d, k] marks which taps k
        # collapse onto source offset index d (d=0 -> p-1, d=1 -> p). Same for cols.
        S = jnp.array([[[1., 0., 0.], [0., 1., 1.]],
                       [[1., 1., 0.], [0., 0., 1.]]], dtype=jnp.float32)
        w_phase = jnp.einsum('pak,qbl,oikl->pqoabi', S, S,
                             weight.astype(jnp.float32))       # (2,2,Co,2,2,Ci)
        w_phase = w_phase.reshape(4, C, 4 * C)
        b2 = bias.astype(jnp.float32).reshape(C, 1)

        kernel = functools.partial(_upsample_conv_kernel, C=C, H=H, W=W)
        out_phase = pl.pallas_call(
            kernel,
            out_shape=jax.ShapeDtypeStruct((N, 4, C, HW), x.dtype),
            grid_spec=pltpu.PrefetchScalarGridSpec(
                num_scalar_prefetch=0,
                grid=(N,),
                in_specs=[
                    pl.BlockSpec((1, C, HW), lambda n: (n, 0, 0)),
                    pl.BlockSpec((4, C, 4 * C), lambda n: (0, 0, 0)),
                    pl.BlockSpec((C, 1), lambda n: (0, 0)),
                ],
                out_specs=pl.BlockSpec((1, 4, C, HW), lambda n: (n, 0, 0, 0)),
            ),
            compiler_params=pltpu.CompilerParams(
                dimension_semantics=("parallel",)),
        )(x_flat, w_phase, b2)
    else:
        out_phase = pl.pallas_call(
            _upsample_only_kernel,
            out_shape=jax.ShapeDtypeStruct((N, 4, C, HW), x.dtype),
            grid_spec=pltpu.PrefetchScalarGridSpec(
                num_scalar_prefetch=0,
                grid=(N,),
                in_specs=[pl.BlockSpec((1, C, HW), lambda n: (n, 0, 0))],
                out_specs=pl.BlockSpec((1, 4, C, HW), lambda n: (n, 0, 0, 0)),
            ),
            compiler_params=pltpu.CompilerParams(
                dimension_semantics=("parallel",)),
        )(x_flat)

    # De-interleave phase-major (n, py, px, c, sy, sx) -> NCHW (layout plumbing in XLA).
    out = out_phase.reshape(N, 2, 2, C, H, W)
    out = out.transpose(0, 3, 4, 1, 5, 2).reshape(N, C, 2 * H, 2 * W)
    return out


def _reference(x, weight, bias, with_conv=True):
    xu = jnp.repeat(jnp.repeat(x, 2, axis=2), 2, axis=3)
    if not with_conv:
        return xu
    out = jax.lax.conv_general_dilated(
        xu, weight, window_strides=(1, 1), padding=((1, 1), (1, 1)),
        dimension_numbers=("NCHW", "OIHW", "NCHW"))
    return out + bias[None, :, None, None]


if __name__ == "__main__":
    key = jax.random.PRNGKey(0)
    kx, kw, kb = jax.random.split(key, 3)

    N, C, H, W = 2, 4, 16, 16
    x = jax.random.normal(kx, (N, C, H, W), dtype=jnp.float32)

    # Deterministic Conv2d(in=C, out=C, k=3) init (PyTorch-style uniform bounds).
    fan_in = C * 3 * 3
    bound = 1.0 / (fan_in ** 0.5)
    weight = jax.random.uniform(kw, (C, C, 3, 3), minval=-bound, maxval=bound,
                                dtype=jnp.float32)
    bias = jax.random.uniform(kb, (C,), minval=-bound, maxval=bound,
                              dtype=jnp.float32)

    out = upsample_forward(x, weight, bias, with_conv=True)
    out = jax.block_until_ready(out)

    ref = _reference(x, weight, bias, with_conv=True)
    assert out.shape == (N, C, 2 * H, 2 * W), out.shape
    err = float(jnp.max(jnp.abs(out - ref)))
    assert jnp.allclose(out, ref, atol=1e-4, rtol=1e-4), err

    # Also exercise the no-conv (pure nearest-upsample) path.
    out2 = jax.block_until_ready(upsample_forward(x, with_conv=False))
    ref2 = _reference(x, weight, bias, with_conv=False)
    assert out2.shape == ref2.shape and bool(jnp.all(out2 == ref2))

    print("KERNEL_OK")
</pallas_src>

<mosaic_0001>
module attributes {stable_mosaic.version = 11 : i64} {
  func.func @_upsample_conv_kernel(%arg0: i32, %arg1: memref<1x4x256xf32, #tpu.memory_space<vmem>>, %arg2: memref<4x4x16xf32, #tpu.memory_space<vmem>>, %arg3: memref<4x1xf32, #tpu.memory_space<vmem>>, %arg4: memref<1x4x4x256xf32, #tpu.memory_space<vmem>>) attributes {dimension_semantics = [#tpu.dimension_semantics<parallel>], iteration_bounds = array<i64: 2>, scalar_prefetch = 0 : i64, scratch_operands = 0 : i64, tpu.core_type = #tpu.core_type<tc>, window_params = [{transform_indices = @transform_0, window_bounds = array<i64: 1, 4, 256>}, {pipeline_mode = #tpu.pipeline_mode<synchronous>, transform_indices = @transform_1, window_bounds = array<i64: 4, 4, 16>}, {pipeline_mode = #tpu.pipeline_mode<synchronous>, transform_indices = @transform_2, window_bounds = array<i64: 4, 1>}, {transform_indices = @transform_3, window_bounds = array<i64: 1, 4, 4, 256>}]} {
    %c0 = arith.constant 0 : index
    %c0_0 = arith.constant 0 : index
    %c0_1 = arith.constant 0 : index
    %0 = vector.load %arg1[%c0, %c0_0, %c0_1] : memref<1x4x256xf32, #tpu.memory_space<vmem>>, vector<1x4x256xf32>
    %1 = vector.shape_cast %0 : vector<1x4x256xf32> to vector<4x256xf32>
    %2 = tpu.iota {dimensions = array<i32: 1>} : vector<4x256xi32>
    %c16_i32 = arith.constant 16 : i32
    %c0_i32 = arith.constant 0 : i32
    %3 = arith.cmpi eq, %c16_i32, %c0_i32 : i32
    %c1_i32 = arith.constant 1 : i32
    %4 = arith.select %3, %c1_i32, %c16_i32 : i32
    %5 = vector.broadcast %4 : i32 to vector<4x256xi32>
    %6 = arith.remsi %2, %5 : vector<4x256xi32>
    %c0_i32_2 = arith.constant 0 : i32
    %7 = vector.broadcast %c0_i32_2 : i32 to vector<4x256xi32>
    %8 = arith.cmpi ne, %6, %7 : vector<4x256xi32>
    %c0_i32_3 = arith.constant 0 : i32
    %9 = vector.broadcast %c0_i32_3 : i32 to vector<4x256xi32>
    %10 = arith.cmpi slt, %6, %9 : vector<4x256xi32>
    %c0_i32_4 = arith.constant 0 : i32
    %11 = arith.cmpi slt, %4, %c0_i32_4 : i32
    %12 = vector.broadcast %11 : i1 to vector<4x256xi1>
    %13 = vector.broadcast %12 : vector<4x256xi1> to vector<4x256xi1>
    %14 = arith.xori %10, %13 : vector<4x256xi1>
    %15 = arith.andi %14, %8 : vector<4x256xi1>
    %16 = vector.broadcast %4 : i32 to vector<4x256xi32>
    %17 = arith.addi %6, %16 : vector<4x256xi32>
    %18 = arith.select %15, %17, %6 : vector<4x256xi1>, vector<4x256xi32>
    %c16_i32_5 = arith.constant 16 : i32
    %19 = vector.broadcast %c16_i32_5 : i32 to vector<4x256xi32>
    %20 = arith.cmpi sge, %2, %19 : vector<4x256xi32>
    %c240_i32 = arith.constant 240 : i32
    %21 = vector.broadcast %c240_i32 : i32 to vector<4x256xi32>
    %22 = arith.cmpi slt, %2, %21 : vector<4x256xi32>
    %c1_i32_6 = arith.constant 1 : i32
    %23 = vector.broadcast %c1_i32_6 : i32 to vector<4x256xi32>
    %24 = arith.cmpi sge, %18, %23 : vector<4x256xi32>
    %c15_i32 = arith.constant 15 : i32
    %25 = vector.broadcast %c15_i32 : i32 to vector<4x256xi32>
    %26 = arith.cmpi slt, %18, %25 : vector<4x256xi32>
    %c17_i32 = arith.constant 17 : i32
    %27 = tpu.dynamic_rotate %1 by %c17_i32 dim 1 : vector<4x256xf32>, i32 -> vector<4x256xf32>
    %28 = arith.andi %20, %24 : vector<4x256xi1>
    %cst = arith.constant 0.000000e+00 : f32
    %29 = vector.broadcast %cst : f32 to vector<4x256xf32>
    %30 = arith.select %28, %27, %29 : vector<4x256xi1>, vector<4x256xf32>
    %c16_i32_7 = arith.constant 16 : i32
    %31 = tpu.dynamic_rotate %1 by %c16_i32_7 dim 1 : vector<4x256xf32>, i32 -> vector<4x256xf32>
    %cst_8 = arith.constant 0.000000e+00 : f32
    %32 = vector.broadcast %cst_8 : f32 to vector<4x256xf32>
    %33 = arith.select %20, %31, %32 : vector<4x256xi1>, vector<4x256xf32>
    %c15_i32_9 = arith.constant 15 : i32
    %34 = tpu.dynamic_rotate %1 by %c15_i32_9 dim 1 : vector<4x256xf32>, i32 -> vector<4x256xf32>
    %35 = arith.andi %20, %26 : vector<4x256xi1>
    %cst_10 = arith.constant 0.000000e+00 : f32
    %36 = vector.broadcast %cst_10 : f32 to vector<4x256xf32>
    %37 = arith.select %35, %34, %36 : vector<4x256xi1>, vector<4x256xf32>
    %c1_i32_11 = arith.constant 1 : i32
    %38 = tpu.dynamic_rotate %1 by %c1_i32_11 dim 1 : vector<4x256xf32>, i32 -> vector<4x256xf32>
    %cst_12 = arith.constant 0.000000e+00 : f32
    %39 = vector.broadcast %cst_12 : f32 to vector<4x256xf32>
    %40 = arith.select %24, %38, %39 : vector<4x256xi1>, vector<4x256xf32>
    %c255_i32 = arith.constant 255 : i32
    %41 = tpu.dynamic_rotate %1 by %c255_i32 dim 1 : vector<4x256xf32>, i32 -> vector<4x256xf32>
    %cst_13 = arith.constant 0.000000e+00 : f32
    %42 = vector.broadcast %cst_13 : f32 to vector<4x256xf32>
    %43 = arith.select %26, %41, %42 : vector<4x256xi1>, vector<4x256xf32>
    %c241_i32 = arith.constant 241 : i32
    %44 = tpu.dynamic_rotate %1 by %c241_i32 dim 1 : vector<4x256xf32>, i32 -> vector<4x256xf32>
    %45 = arith.andi %22, %24 : vector<4x256xi1>
    %cst_14 = arith.constant 0.000000e+00 : f32
    %46 = vector.broadcast %cst_14 : f32 to vector<4x256xf32>
    %47 = arith.select %45, %44, %46 : vector<4x256xi1>, vector<4x256xf32>
    %c240_i32_15 = arith.constant 240 : i32
    %48 = tpu.dynamic_rotate %1 by %c240_i32_15 dim 1 : vector<4x256xf32>, i32 -> vector<4x256xf32>
    %cst_16 = arith.constant 0.000000e+00 : f32
    %49 = vector.broadcast %cst_16 : f32 to vector<4x256xf32>
    %50 = arith.select %22, %48, %49 : vector<4x256xi1>, vector<4x256xf32>
    %c239_i32 = arith.constant 239 : i32
    %51 = tpu.dynamic_rotate %1 by %c239_i32 dim 1 : vector<4x256xf32>, i32 -> vector<4x256xf32>
    %52 = arith.andi %22, %26 : vector<4x256xi1>
    %cst_17 = arith.constant 0.000000e+00 : f32
    %53 = vector.broadcast %cst_17 : f32 to vector<4x256xf32>
    %54 = arith.select %52, %51, %53 : vector<4x256xi1>, vector<4x256xf32>
    %c0_18 = arith.constant 0 : index
    %c0_19 = arith.constant 0 : index
    %55 = vector.load %arg3[%c0_18, %c0_19] : memref<4x1xf32, #tpu.memory_space<vmem>>, vector<4x1xf32>
    %56 = tpu.concatenate %30, %33, %40, %1 in 0 : vector<4x256xf32>, vector<4x256xf32>, vector<4x256xf32>, vector<4x256xf32> -> vector<16x256xf32>
    %c0_20 = arith.constant 0 : index
    %c0_21 = arith.constant 0 : index
    %c0_22 = arith.constant 0 : index
    %57 = vector.load %arg2[%c0_20, %c0_21, %c0_22] : memref<4x4x16xf32, #tpu.memory_space<vmem>>, vector<1x4x16xf32>
    %58 = vector.shape_cast %57 : vector<1x4x16xf32> to vector<4x16xf32>
    %cst_23 = arith.constant dense<0.000000e+00> : vector<4x256xf32>
    %59 = tpu.matmul %58, %56, %cst_23 {dimension_numbers = #tpu.dot_dimension_numbers<[1], [0], [0], [1], [0, 0, 1, 1], [], []>} : vector<4x16xf32>, vector<16x256xf32>, vector<4x256xf32> -> vector<4x256xf32>
    %60 = vector.broadcast %55 : vector<4x1xf32> to vector<4x256xf32>
    %61 = arith.addf %59, %60 : vector<4x256xf32>
    %c0_24 = arith.constant 0 : index
    %c0_25 = arith.constant 0 : index
    %c0_26 = arith.constant 0 : index
    %c0_27 = arith.constant 0 : index
    %62 = vector.load %arg4[%c0_24, %c0_25, %c0_26, %c0_27] : memref<1x4x4x256xf32, #tpu.memory_space<vmem>>, vector<1x1x4x256xf32>
    %63 = vector.shape_cast %62 : vector<1x1x4x256xf32> to vector<4x256xf32>
    %64 = vector.shape_cast %61 : vector<4x256xf32> to vector<1x1x4x256xf32>
    tpu.vector_store %arg4[%c0_24, %c0_25, %c0_26, %c0_27], %64 {strides = array<i32>} : memref<1x4x4x256xf32, #tpu.memory_space<vmem>>, vector<1x1x4x256xf32>,
    %65 = tpu.concatenate %33, %37, %1, %43 in 0 : vector<4x256xf32>, vector<4x256xf32>, vector<4x256xf32>, vector<4x256xf32> -> vector<16x256xf32>
    %c1 = arith.constant 1 : index
    %c0_28 = arith.constant 0 : index
    %c0_29 = arith.constant 0 : index
    %66 = vector.load %arg2[%c1, %c0_28, %c0_29] : memref<4x4x16xf32, #tpu.memory_space<vmem>>, vector<1x4x16xf32>
    %67 = vector.shape_cast %66 : vector<1x4x16xf32> to vector<4x16xf32>
    %cst_30 = arith.constant dense<0.000000e+00> : vector<4x256xf32>
    %68 = tpu.matmul %67, %65, %cst_30 {dimension_numbers = #tpu.dot_dimension_numbers<[1], [0], [0], [1], [0, 0, 1, 1], [], []>} : vector<4x16xf32>, vector<16x256xf32>, vector<4x256xf32> -> vector<4x256xf32>
    %69 = vector.broadcast %55 : vector<4x1xf32> to vector<4x256xf32>
    %70 = arith.addf %68, %69 : vector<4x256xf32>
    %c0_31 = arith.constant 0 : index
    %c1_32 = arith.constant 1 : index
    %c0_33 = arith.constant 0 : index
    %c0_34 = arith.constant 0 : index
    %71 = vector.load %arg4[%c0_31, %c1_32, %c0_33, %c0_34] : memref<1x4x4x256xf32, #tpu.memory_space<vmem>>, vector<1x1x4x256xf32>
    %72 = vector.shape_cast %71 : vector<1x1x4x256xf32> to vector<4x256xf32>
    %73 = vector.shape_cast %70 : vector<4x256xf32> to vector<1x1x4x256xf32>
    tpu.vector_store %arg4[%c0_31, %c1_32, %c0_33, %c0_34], %73 {strides = array<i32>} : memref<1x4x4x256xf32, #tpu.memory_space<vmem>>, vector<1x1x4x256xf32>,
    %74 = tpu.concatenate %40, %1, %47, %50 in 0 : vector<4x256xf32>, vector<4x256xf32>, vector<4x256xf32>, vector<4x256xf32> -> vector<16x256xf32>
    %c2 = arith.constant 2 : index
    %c0_35 = arith.constant 0 : index
    %c0_36 = arith.constant 0 : index
    %75 = vector.load %arg2[%c2, %c0_35, %c0_36] : memref<4x4x16xf32, #tpu.memory_space<vmem>>, vector<1x4x16xf32>
    %76 = vector.shape_cast %75 : vector<1x4x16xf32> to vector<4x16xf32>
    %cst_37 = arith.constant dense<0.000000e+00> : vector<4x256xf32>
    %77 = tpu.matmul %76, %74, %cst_37 {dimension_numbers = #tpu.dot_dimension_numbers<[1], [0], [0], [1], [0, 0, 1, 1], [], []>} : vector<4x16xf32>, vector<16x256xf32>, vector<4x256xf32> -> vector<4x256xf32>
    %78 = vector.broadcast %55 : vector<4x1xf32> to vector<4x256xf32>
    %79 = arith.addf %77, %78 : vector<4x256xf32>
    %c0_38 = arith.constant 0 : index
    %c2_39 = arith.constant 2 : index
    %c0_40 = arith.constant 0 : index
    %c0_41 = arith.constant 0 : index
    %80 = vector.load %arg4[%c0_38, %c2_39, %c0_40, %c0_41] : memref<1x4x4x256xf32, #tpu.memory_space<vmem>>, vector<1x1x4x256xf32>
    %81 = vector.shape_cast %80 : vector<1x1x4x256xf32> to vector<4x256xf32>
    %82 = vector.shape_cast %79 : vector<4x256xf32> to vector<1x1x4x256xf32>
    tpu.vector_store %arg4[%c0_38, %c2_39, %c0_40, %c0_41], %82 {strides = array<i32>} : memref<1x4x4x256xf32, #tpu.memory_space<vmem>>, vector<1x1x4x256xf32>,
    %83 = tpu.concatenate %1, %43, %50, %54 in 0 : vector<4x256xf32>, vector<4x256xf32>, vector<4x256xf32>, vector<4x256xf32> -> vector<16x256xf32>
    %c3 = arith.constant 3 : index
    %c0_42 = arith.constant 0 : index
    %c0_43 = arith.constant 0 : index
    %84 = vector.load %arg2[%c3, %c0_42, %c0_43] : memref<4x4x16xf32, #tpu.memory_space<vmem>>, vector<1x4x16xf32>
    %85 = vector.shape_cast %84 : vector<1x4x16xf32> to vector<4x16xf32>
    %cst_44 = arith.constant dense<0.000000e+00> : vector<4x256xf32>
    %86 = tpu.matmul %85, %83, %cst_44 {dimension_numbers = #tpu.dot_dimension_numbers<[1], [0], [0], [1], [0, 0, 1, 1], [], []>} : vector<4x16xf32>, vector<16x256xf32>, vector<4x256xf32> -> vector<4x256xf32>
    %87 = vector.broadcast %55 : vector<4x1xf32> to vector<4x256xf32>
    %88 = arith.addf %86, %87 : vector<4x256xf32>
    %c0_45 = arith.constant 0 : index
    %c3_46 = arith.constant 3 : index
    %c0_47 = arith.constant 0 : index
    %c0_48 = arith.constant 0 : index
    %89 = vector.load %arg4[%c0_45, %c3_46, %c0_47, %c0_48] : memref<1x4x4x256xf32, #tpu.memory_space<vmem>>, vector<1x1x4x256xf32>
    %90 = vector.shape_cast %89 : vector<1x1x4x256xf32> to vector<4x256xf32>
    %91 = vector.shape_cast %88 : vector<4x256xf32> to vector<1x1x4x256xf32>
    tpu.vector_store %arg4[%c0_45, %c3_46, %c0_47, %c0_48], %91 {strides = array<i32>} : memref<1x4x4x256xf32, #tpu.memory_space<vmem>>, vector<1x1x4x256xf32>,
    return
  }
  func.func @transform_0(%arg0: i32) -> (i32, i32, i32) {
    %c0_i32 = arith.constant 0 : i32
    %c0_i32_0 = arith.constant 0 : i32
    %c0_i32_1 = arith.constant 0 : i32
    return %arg0, %c0_i32, %c0_i32_0 : i32, i32, i32
  }
  func.func @transform_1(%arg0: i32) -> (i32, i32, i32) {
    %c0_i32 = arith.constant 0 : i32
    %c0_i32_0 = arith.constant 0 : i32
    %c0_i32_1 = arith.constant 0 : i32
    %c0_i32_2 = arith.constant 0 : i32
    return %c0_i32, %c0_i32_0, %c0_i32_1 : i32, i32, i32
  }
  func.func @transform_2(%arg0: i32) -> (i32, i32) {
    %c0_i32 = arith.constant 0 : i32
    %c0_i32_0 = arith.constant 0 : i32
    %c0_i32_1 = arith.constant 0 : i32
    return %c0_i32, %c0_i32_0 : i32, i32
  }
  func.func @transform_3(%arg0: i32) -> (i32, i32, i32, i32) {
    %c0_i32 = arith.constant 0 : i32
    %c0_i32_0 = arith.constant 0 : i32
    %c0_i32_1 = arith.constant 0 : i32
    %c0_i32_2 = arith.constant 0 : i32
    return %arg0, %c0_i32, %c0_i32_0, %c0_i32_1 : i32, i32, i32, i32
  }
}

</mosaic_0001>

<bundles_post_ra>
// kernel: tpu_custom_call.1
= control target key start
LH: loop header
LB: loop body
LE: loop exit
PB: predicated region body
PF: predicated region fallthrough
CT: control target
= control target key end

     0   :  { %8 = vsyncpa [#allocation3], 0  ;;  %s1380_s0 = inlined_call_operand.hbm [shape: f32[2,4,256], index: 0, kind: input, shape index: {}]   ;;  %s1381_s1 = inlined_call_operand.hbm [shape: f32[4,4,16], index: 1, kind: input, shape index: {}]   ;;  %s1382_s2 = inlined_call_operand.vmem [shape: f32[4,1], index: 2, kind: input, shape index: {}]   ;;  %s1383_s3 = inlined_call_operand.hbm [shape: f32[2,4,4,256], index: 3, kind: output, shape index: {}]  }
   0x1   :  { %10 = vsyncpa [#allocation3 + $0x1], 0 }
   0x2   :  { %11 = vsyncpa [#allocation6], 0 }
   0x3   :  { %12 = vsyncpa [#allocation4], 0 }
   0x4   :  { %14 = vsyncpa [#allocation4 + $0x1], 0  ;;  %s1056_s12 = smov 0   ;;  %s1058_s13 = smov 0  }
   0x5   :  { %s1060_s14 = smov 0   ;;  %s1062_s15 = smov 0  }
   0x6 LB: > { %s1077_s16 = sadd.s32 4294967295, %s1017_s15   ;;  %s796_s17 = sadd.s32 4294967294, %s1017_s15   ;;  %s1017_s15 = sphi %s1062_s15, %s1417_s15   ;;  %s1013_s14 = sphi %s1060_s14, %s1416_s14   ;;  %s1009_s13 = sphi %s1058_s13, %s1415_s13   ;;  %s1005_s12 = sphi %s1056_s12, %s1414_s12  }
   0x7   : > { %p40_p0 = scmp.ne.s32.totalorder %s1009_s13, %s1005_s12  ;;  %p1384_p1 = scmp.eq.s32.totalorder %s1077_s16, 0 }
   0x8   : > { %p112_p3 = scmp.eq.s32.totalorder %s796_s17, 1  ;;  %p797_p5 = scmp.ge.s32.totalorder %s1017_s15, 1 }
   0x9   : > { %p1086_p4 = por %p1384_p1, %p40_p0  ;;  %p119_p7 = scmp.lt.s32.totalorder %s1017_s15, 3 }
   0xa   : > { %p1091_p6 = por %p112_p3, %p40_p0  ;;  %s1019_s21 = smov [#allocation5]  }
   0xb   : > { %s1388_s18 = scalar_select %p1086_p4, 1, 0 }
   0xc   : > { %s1389_s19 = scalar_select %p1091_p6, 1, 0 }
   0xd   : > { %p1096_p8 = pnand %p797_p5, %p119_p7  ;;  %s131_s22 = sshll.u32 %s1019_s21, 4  ;;  %s132_s22 = int_to_ptr.vmem [resolvable:$true] %s131_s22 }
   0xe   : > { %s1110_s24 = sadd.s32 1, %s1017_s15   ;;  %s27_s25 = sadd.s32 1, %s1013_s14 }
   0xf   : > { %s1390_s20 = scalar_select %p1096_p8, 1, 0 }
  0x10   : > { %p829_p9 = pneg %p1096_p8  ;;  %s24_s26 = ssub.s32 %s1017_s15, %s1110_s24 }
  0x11   : > { %s906_s27 = scalar_lea.vmem %s132_s22, 256  ;;  %p914_p5 = scmp.lt.s32.totalorder %s132_s22, %s132_s22 }
  0x12   : > { %p1105_p11 = pnand %p829_p9, %p1384_p1  ;;  %p907_p13 = scmp.ne.s32.totalorder %s132_s22, %s906_s27 }
  0x13   : > { %p915_p7 = scmp.lt.s32.totalorder %s906_s27, %s906_s27 }
  0x14   : > { %p897_p12 = pneg %p1105_p11 }
  0x15   : > { %p916_p10 = por %p915_p7, %p914_p5 }
  0x16   : > { %p909_p0 = pnand %p907_p13, %p897_p12 }
  0x18   : > { %p910_p3 = pneg %p909_p0 }
  0x1a   : > { %p917_p2 = pnand %p916_p10, %p910_p3 }
  0x1c   : > { %920 = shalt.err (!%p917_p2)
}
  0x1d   : > { %s1020_s28 = smov 64   ;;  %s1021_s29 = smov 4  }
  0x1e   : > { %832 = dma.hbm_to_vmem [thread:$0]  (!%p1105_p11), %s1381_s1, 256, %s132_s22, [#allocation6], %s1020_s28, %s1020_s28, %s1021_s29  }
  0x1f   : > { %p25_p9 = scmp.eq.s32.totalorder %s24_s26, 0  ;;  %p34_p12 = scmp.ne.s32.totalorder %s1013_s14, %s1009_s13 }
  0x20   : > { %p35_p10 = scmp.eq.s32.totalorder %s1017_s15, 0  ;;  %p842_p2 = scmp.lt.s32.totalorder %s1017_s15, 2 }
  0x21   : > { %s1127_s5 = scalar_select %p25_p9, %s1013_s14, %s27_s25  }
  0x22   : > { %p36_p13 = por %p35_p10, %p34_p12  ;;  %p1392_p0 = scmp.eq.s32.totalorder %s1077_s16, 1 }
  0x23   : > { %s148_s7 = sand.u32 1, %s1013_s14   ;;  %s819_s8 = sshll.u32 %s1017_s15, 7 }
  0x24   : > { %p1131_p3 = por %p1392_p0, %p34_p12  ;;  %s800_s9 = sshll.u32 %s148_s7, 3 }
  0x25   : > { %s1140_s17 = scalar_lea.hbm %s1380_s0, %s819_s8  ;;  %s152_s21 = scalar_lea.vmem [#allocation2], %s800_s9 }
  0x26   : > { %s1393_s6 = scalar_select %p1131_p3, 1, 0 }
  0x27   : > { %s160_s22 = sshll.u32 %s152_s21, 4  ;;  %p1142_p11 = pnand %p842_p2, %p36_p13  ;;  %s161_s22 = int_to_ptr.vmem [resolvable:$true] %s160_s22 }
  0x28   : > { %s149_s25 = scalar_lea.sflag [#allocation3], %s148_s7  ;;  %s921_s26 = scalar_lea.hbm %s1140_s17, 128 }
  0x29   : > { %p922_p5 = scmp.ne.s32.totalorder %s1140_s17, %s921_s26  ;;  %p923_p7 = pneg %p1142_p11 }
  0x2a   : > { %s926_s29 = scalar_lea.hbm %s1380_s0, 256  ;;  %p927_p10 = scmp.lt.s32.totalorder %s1140_s17, %s1380_s0 }
  0x2b   : > { %p924_p9 = pnand %p923_p7, %p922_p5  ;;  %p928_p2 = scmp.lt.s32.totalorder %s926_s29, %s921_s26 }
  0x2d   : > { %p925_p12 = pneg %p924_p9  ;;  %p929_p13 = por %p928_p2, %p927_p10 }
  0x2f   : > { %p930_p0 = pnand %p929_p13, %p925_p12 }
  0x31   : > { %933 = shalt.err (!%p930_p0)
}
  0x32   : > { %s934_s8 = scalar_lea.vmem %s161_s22, 128  ;;  %s1022_s7 = smov [#allocation2]  }
  0x33   : > { %p935_p1 = scmp.ne.s32.totalorder %s161_s22, %s934_s8  ;;  %s939_s9 = sshll.u32 %s1022_s7, 4  ;;  %s940_s9 = int_to_ptr.vmem [resolvable:$false] %s939_s9 }
  0x34   : > { %s941_s10 = scalar_lea.vmem %s940_s9, 256  ;;  %p942_p5 = scmp.lt.s32.totalorder %s161_s22, %s940_s9 }
  0x35   : > { %p937_p6 = pnand %p935_p1, %p923_p7  ;;  %p943_p9 = scmp.lt.s32.totalorder %s941_s10, %s934_s8 }
  0x37   : > { %p938_p3 = pneg %p937_p6  ;;  %p944_p4 = por %p943_p9, %p942_p5 }
  0x39   : > { %p945_p8 = pnand %p944_p4, %p938_p3 }
  0x3b   : > { %948 = shalt.err (!%p945_p8)
}
  0x3c   : > { %836 = dma.hbm_to_vmem [thread:$0]  (!%p1142_p11), %s1140_s17, 128, %s161_s22, %s149_s25  }
  0x3d   : > { %p1395_p12 = scmp.ne.s32.totalorder %s1390_s20, 0 }
  0x3e   : > { %s1163_s11 = sand.u32 (!%p1395_p12), 1, %s1009_s13   ;;  %p1396_p1 = scmp.ne.s32.totalorder (!%p1395_p12), %s1388_s18, 0 }
  0x3f   : > { %169 = sbr.rel (%p1395_p12) target bundleno = 436 (0x1b4), region = 32  ;;  %s804_s21 = sshll.u32 (!%p1395_p12), %s1163_s11, 3 }
  0x40   : > { %s172_s26 = scalar_lea.sflag (!%p1395_p12), [#allocation3], %s1163_s11  ;;  %s175_s27 = scalar_lea.vmem (!%p1395_p12), [#allocation2], %s804_s21 }
  0x44   : > { %992 = dma.done.wait (%p1396_p1), %s172_s26, 128  }
  0x45   : > { %994 = vsyncadd (%p1396_p1), %s172_s26, 4294967168  ;;  %p1397_p4 = scmp.eq.s32.totalorder %s1077_s16, 0 }
  0x47   : > { %996 = dma.done.wait (%p1397_p4), [#allocation6], 256   ;;  %p1398_p6 = pmov %p1397_p4 }
  0x48   : > { %v1175_v0 = vld [vmem:[%s175_s27] sm:$0xff]  ;;  %s1023_s20 = smov 15   ;;  %s1024_s17 = smov 127   ;;  %v1027_v2 = vmov 0.0   ;;  %v1030_v3 = vmov 0   ;;  %v203_v5 = vlaneseq  ;;  %vm330_vm9 = vcmask 1043456  }
  0x49   : > { %998 = vsyncadd (%p1398_p6), [#allocation6], 4294967040  ;;  %261 = vrot.lane.b32.xlu1 %v1175_v0, %s1023_s20  ;;  %281 = vrot.lane.b32.xlu0 %v1175_v0, %s1024_s17  ;;  %v1181_v1 = vcombine.high %v1175_v0, %v1175_v0  ;;  %s1025_s18 = smov 1   ;;  %s1026_s22 = smov 16   ;;  %v321_v4 = vld [vmem:[%s1382_s2] sm:$0xf]  ;;  %v328_v21 = vcombine.low %v1175_v0, %v1175_v0 }
  0x4a   : > { %409 = vmatprep.mubr.f32.mxu0 %v1027_v2  ;;  %506 = vmatprep.mubr.f32.mxu1 %v1027_v2  ;;  %s1028_s23 = smov 17   ;;  %s1029_s25 = smov 112   ;;  %v1202_v6 = vand.u32 127, %v203_v5  ;;  %vm341_vm13 = vcmask 130048   ;;  %v438_v50 = vld [vmem:[#allocation5 + $0x4] sm:$0xf] }
  0x4b   : > { %892 = vset.pattern.permute.xlu0 %v1030_v3  ;;  %s1031_s28 = smov 111   ;;  %s1032_s29 = smov 113   ;;  %v335_v61 = vld [vmem:[#allocation5] sm:$0xf] }
  0x4c   : > { %v1205_v7 = vadd.s32 128, %v1202_v6  ;;  %v210_v8 = vand.u32 15, %v1202_v6  ;;  %vm230_vm0 = vcmp.ge.s32.totalorder %v1202_v6, 16  ;;  %vm265_vm2 = vcmp.lt.s32.totalorder %v1202_v6, 15  ;;  %s806_s8 = sshll.u32 %s1163_s11, 5  ;;  %s820_s10 = sshll.u32 %s1077_s16, 9 }
  0x4d   : > { %272 = vrot.lane.b32.xlu0 %v1175_v0, %s1025_s18  ;;  %263 = vrot.lane.b32.xlu1 %v1181_v1, %s1023_s20  ;;  %vm276_vm5 = vcmp.lt.s32.totalorder %v1202_v6, 1  ;;  %vm285_vm6 = vcmp.lt.s32.totalorder %v1202_v6, 127  ;;  %vm256_vm10 = vcmp.lt.s32.totalorder %v1202_v6, 16  ;;  %vm245_vm11 = vcmp.lt.s32.totalorder %v1202_v6, 17  ;;  %s201_s7 = scalar_lea.vmem [#allocation7], %s806_s8  ;;  %s1337_s27 = scalar_lea.hbm %s1383_s3, %s820_s10 }
  0x4e   : > { %v217_v11 = vand.u32 15, %v1205_v7  ;;  %vm1210_vm1 = vcmp.lt.s32.totalorder %v210_v8, 15  ;;  %vm1233_vm8 = vcmp.ge.s32.totalorder %v210_v8, 1  ;;  %vm305_vm14 = vcmp.lt.s32.totalorder %v1202_v6, 112  ;;  %s713_s9 = sshll.u32 %s201_s7, 4  ;;  %s700_s20 = scalar_lea.sflag [#allocation4], %s1163_s11  ;;  %s1332_s9 = int_to_ptr.vmem [resolvable:$true] %s713_s9 }
  0x4f   : > { %vm1223_vm4 = vmand %vm230_vm0, %vm1210_vm1  ;;  %vm233_vm15 = vcmp.lt.s32.totalorder %v1205_v7, 240  ;;  %p1411_p3 = scmp.ne.s32.totalorder %s1393_s6, 0  ;;  %s1033_s16 = smov [#allocation7]  }
  0x50   : > { %vm1215_vm3 = vcmp.lt.s32.totalorder %v217_v11, 15  ;;  %vm1229_vm7 = vcmp.ge.s32.totalorder %v217_v11, 1  ;;  %vm1283_vm12 = vmand %vm230_vm0, %vm1233_vm8 }
  0x51   : > { %274 = vrot.lane.b32.xlu1 %v1181_v1, %s1025_s18  ;;  %283 = vrot.lane.b32.xlu0 %v1181_v1, %s1024_s17  ;;  %s949_s17 = scalar_lea.vmem %s1332_s9, 512  ;;  %s953_s18 = sshll.u32 %s1033_s16, 4  ;;  %s954_s18 = int_to_ptr.vmem [resolvable:$false] %s953_s18 }
  0x52   : > { %p950_p8 = scmp.ne.s32.totalorder %s1332_s9, %s949_s17  ;;  %p956_p10 = scmp.lt.s32.totalorder %s1332_s9, %s954_s18 }
  0x54   : > { %p951_p11 = pnand %p950_p8, %p1411_p3 }
  0x55   : > { %254 = vrot.lane.b32.xlu1 %v1181_v1, %s1026_s22  ;;  %252 = vrot.lane.b32.xlu0 %v1175_v0, %s1026_s22  ;;  %s955_s22 = scalar_lea.vmem %s954_s18, 1024 }
  0x56   : > { %p952_p7 = pneg %p951_p11  ;;  %p957_p2 = scmp.lt.s32.totalorder %s955_s22, %s949_s17 }
  0x58   : > { %p958_p13 = por %p957_p2, %p956_p10 }
  0x59   : > { %243 = vrot.lane.b32.xlu1 %v1181_v1, %s1028_s23  ;;  %241 = vrot.lane.b32.xlu0 %v1175_v0, %s1028_s23 }
  0x5a   : > { %p959_p0 = pnand %p958_p13, %p952_p7 }
  0x5d   : > { %303 = vrot.lane.b32.xlu1 %v1181_v1, %s1029_s25  ;;  %301 = vrot.lane.b32.xlu0 %v1175_v0, %s1029_s25 }
  0x61   : > { %312 = vrot.lane.b32.xlu1 %v1181_v1, %s1031_s28  ;;  %310 = vrot.lane.b32.xlu0 %v1175_v0, %s1031_s28 }
  0x65   : > { %292 = vrot.lane.b32.xlu1 %v1181_v1, %s1032_s29  ;;  %290 = vrot.lane.b32.xlu0 %v1175_v0, %s1032_s29 }
  0x69   : > { %338 = vperm.xlu0 %892, %v321_v4  }
  0xbb   : > { %v262_v9 = vpop.permute.xlu1 %261  ;;  %v282_v10 = vpop.permute.xlu0 %281 }
  0xbf   : > { %v273_v13 = vpop.permute.xlu0 %272  ;;  %v264_v14 = vpop.permute.xlu1 %263 }
  0xc0   : > { %v266_v17 = vsel %vm265_vm2, %v262_v9, %v264_v14  ;;  %v267_v18 = vsel %vm265_vm2, %v264_v14, %v262_v9  ;;  %vm318_vm2 = vmand %vm233_vm15, %vm1215_vm3 }
  0xc1   : > { %v270_v22 = vsel %vm1223_vm4, %v267_v18, 0.0  ;;  %v271_v23 = vsel %vm1215_vm3, %v266_v17, 0.0  ;;  %vm294_vm4 = vcmp.lt.s32.totalorder %v1202_v6, 113 }
  0xc2   : > { %v423_v38 = vrot.slane %v270_v22, 4  ;;  %v424_v39 = vrot.slane %v271_v23, 4 }
  0xc3   : > { %v275_v24 = vpop.permute.xlu1 %274  ;;  %v284_v25 = vpop.permute.xlu0 %283 }
  0xc4   : > { %v277_v26 = vsel %vm276_vm5, %v273_v13, %v275_v24  ;;  %v278_v27 = vsel %vm276_vm5, %v275_v24, %v273_v13  ;;  %v286_v28 = vsel %vm285_vm6, %v282_v10, %v284_v25  ;;  %v287_v29 = vsel %vm285_vm6, %v284_v25, %v282_v10  ;;  %v618_v24 = vld [vmem:[#allocation5 + $0xc] sm:$0xf]  ;;  %v528_v25 = vld [vmem:[#allocation5 + $0x8] sm:$0xf] }
  0xc5   : > { %v288_v30 = vsel %vm1210_vm1, %v286_v28, 0.0  ;;  %v289_v31 = vsel %vm1215_vm3, %v287_v29, 0.0  ;;  %v280_v32 = vsel %vm1229_vm7, %v277_v26, 0.0  ;;  %v279_v33 = vsel %vm1233_vm8, %v278_v27, 0.0  ;;  %vm298_vm3 = vmand %vm233_vm15, %vm1229_vm7 }
  0xc6   : > { %v429_v34 = vrot.slane %v288_v30, 4  ;;  %v430_v35 = vrot.slane %v289_v31, 4  ;;  %v1254_v36 = vsel %vm330_vm9, %v280_v32, %v1175_v0  ;;  %v1257_v37 = vsel %vm330_vm9, %v279_v33, %v328_v21 }
  0xc7   : > { %373 = vmatprep.subr.mxu0 %v1254_v36  ;;  %v255_v40 = vpop.permute.xlu1 %254  ;;  %v253_v41 = vpop.permute.xlu0 %252 }
  0xc8   : > { %v257_v42 = vsel %vm256_vm10, %v253_v41, %v255_v40  ;;  %v258_v43 = vsel %vm256_vm10, %v255_v40, %v253_v41  ;;  %374 = vmatpush1.msra.mxu0 %v1257_v37  ;;  %v1267_v44 = vsel %vm330_vm9, %v1181_v1, %v430_v35  ;;  %v1271_v45 = vsel %vm330_vm9, %v1175_v0, %v429_v34 }
  0xc9   : > { %v259_v46 = vsel %vm230_vm0, %v258_v43, 0.0  ;;  %470 = vmatprep.subr.mxu1 %v1267_v44  ;;  %v434_v47 = vsel %vm330_vm9, %v257_v42, %v424_v39  ;;  %v325_v54 = vrot.slane %v257_v42, 4  ;;  %vm314_vm0 = vcmp.lt.s32.totalorder %v1202_v6, 111 }
  0xca   : > { %471 = vmatpush1.msra.mxu1 %v1271_v45  ;;  %v433_v49 = vsel %vm330_vm9, %v259_v46, %v423_v38  ;;  %v324_v53 = vrot.slane %v259_v46, 4 }
  0xcb   : > { %v244_v51 = vpop.permute.xlu1 %243  ;;  %472 = vmatprep.subr.mxu1 %v434_v47  ;;  %v242_v52 = vpop.permute.xlu0 %241 }
  0xcc   : > { %v246_v55 = vsel %vm245_vm11, %v242_v52, %v244_v51  ;;  %v247_v56 = vsel %vm245_vm11, %v244_v51, %v242_v52  ;;  %473 = vmatpush1.msra.mxu1 %v433_v49 }
  0xcd   : > { %v250_v57 = vsel %vm1283_vm12, %v247_v56, 0.0  ;;  %v251_v58 = vsel %vm1229_vm7, %v246_v55, 0.0  ;;  %808 = vmatmul.mubr.msk.f32.vlgmr.msra.gmra.mxu1 %vm341_vm13, %v438_v50 }
  0xce   : > { %v332_v59 = vsel %vm330_vm9, %v251_v58, %v325_v54  ;;  %v331_v60 = vsel %vm330_vm9, %v250_v57, %v324_v53  ;;  %686 = vmatprep.mubr.f32.mxu1 %v1027_v2 }
  0xcf   : > { %v304_v62 = vpop.permute.xlu1 %303  ;;  %375 = vmatprep.subr.mxu0 %v332_v59  ;;  %v302_v63 = vpop.permute.xlu0 %301 }
  0xd0   : > { %376 = vmatpush1.msra.mxu0 %v331_v60  ;;  %v307_v0 = vsel %vm305_vm14, %v304_v62, %v302_v63  ;;  %v306_v4 = vsel %vm305_vm14, %v302_v63, %v304_v62 }
  0xd1   : > { %807 = vmatmul.mubr.msk.f32.vlgmr.msra.gmra.mxu0 %vm341_vm13, %v335_v61  ;;  %v309_v5 = vsel %vm233_vm15, %v307_v0, 0.0 }
  0xd2   : > { %596 = vmatprep.mubr.f32.mxu0 %v1027_v2  ;;  %v521_v2 = vrot.slane %v306_v4, 4  ;;  %v522_v15 = vrot.slane %v309_v5, 4 }
  0xd3   : > { %v313_v1 = vpop.permute.xlu1 %312  ;;  %v311_v3 = vpop.permute.xlu0 %310 }
  0xd4   : > { %v315_v8 = vsel %vm314_vm0, %v311_v3, %v313_v1  ;;  %v316_v9 = vsel %vm314_vm0, %v313_v1, %v311_v3 }
  0xd5   : > { %v319_v10 = vsel %vm1210_vm1, %v315_v8, 0.0  ;;  %v320_v11 = vsel %vm318_vm2, %v316_v9, 0.0 }
  0xd6   : > { %v611_v13 = vrot.slane %v319_v10, 4  ;;  %v612_v14 = vrot.slane %v320_v11, 4 }
  0xd7   : > { %v293_v16 = vpop.permute.xlu1 %292  ;;  %v291_v17 = vpop.permute.xlu0 %290 }
  0xd8   : > { %v295_v18 = vsel %vm294_vm4, %v291_v17, %v293_v16  ;;  %v296_v21 = vsel %vm294_vm4, %v293_v16, %v291_v17  ;;  %v616_v22 = vsel %vm330_vm9, %v309_v5, %v612_v14  ;;  %v615_v12 = vsel %vm330_vm9, %v306_v4, %v611_v13 }
  0xd9   : > { %v299_v6 = vsel %vm1233_vm8, %v295_v18, 0.0  ;;  %v300_v23 = vsel %vm298_vm3, %v296_v21, 0.0  ;;  %650 = vmatprep.subr.mxu1 %v616_v22 }
  0xda   : > { %651 = vmatpush1.msra.mxu1 %v615_v12  ;;  %v526_v7 = vsel %vm330_vm9, %v300_v23, %v522_v15  ;;  %v525_v19 = vsel %vm330_vm9, %v299_v6, %v521_v2 }
  0xdb   : > { %560 = vmatprep.subr.mxu0 %v526_v7  ;;  %652 = vmatprep.subr.mxu1 %v1267_v44 }
  0xdc   : > { %561 = vmatpush1.msra.mxu0 %v525_v19  ;;  %653 = vmatpush1.msra.mxu1 %v1271_v45 }
  0xdd   : > { %562 = vmatprep.subr.mxu0 %v1254_v36  ;;  %812 = vmatmul.mubr.msk.f32.vlgmr.msra.gmra.mxu1 %vm341_vm13, %v618_v24 }
  0xde   : > { %563 = vmatpush1.msra.mxu0 %v1257_v37 }
  0xdf   : > { %810 = vmatmul.mubr.msk.f32.vlgmr.msra.gmra.mxu0 %vm341_vm13, %v528_v25 }
  0xe4   : > { %v339_v20 = vpop.permute.xlu0 %338 }
 0x18d   : > { %v508_v26 = vpop.f32.mrf.mxu1 }
 0x18e   : > { %v509_v27 = vadd.f32 %v508_v26, %v339_v20 }
 0x18f   : > { %v510_v28 = vpop.f32.mrf.mxu1 }
 0x190   : > { %v511_v29 = vadd.f32 %v510_v28, %v339_v20 }
 0x191   : > { %v411_v30 = vpop.f32.mrf.mxu0 }
 0x192   : > { %v412_v31 = vadd.f32 %v411_v30, %v339_v20  ;;  %v515_v32 = vcombine.low %v509_v27, %v511_v29 }
 0x193   : > { %v413_v33 = vpop.f32.mrf.mxu0 }
 0x194   : > { %v414_v34 = vadd.f32 %v413_v33, %v339_v20  ;;  %809 = vst [vmem:[%s201_s7 + $0x8] sm:$0xff] %v515_v32 }
 0x196   : > { %v418_v35 = vcombine.low %v412_v31, %v414_v34 }
 0x198   : > { %420 = vst [vmem:[%s201_s7] sm:$0xff] %v418_v35 }
 0x19d   : > { %v688_v36 = vpop.f32.mrf.mxu1 }
 0x19e   : > { %v689_v37 = vadd.f32 %v688_v36, %v339_v20 }
 0x19f   : > { %v598_v38 = vpop.f32.mrf.mxu0  ;;  %v690_v39 = vpop.f32.mrf.mxu1 }
 0x1a0   : > { %v691_v40 = vadd.f32 %v690_v39, %v339_v20  ;;  %v599_v42 = vadd.f32 %v598_v38, %v339_v20 }
 0x1a1   : > { %v600_v41 = vpop.f32.mrf.mxu0 }
 0x1a2   : > { %v695_v43 = vcombine.low %v689_v37, %v691_v40  ;;  %v601_v44 = vadd.f32 %v600_v41, %v339_v20 }
 0x1a4   : > { %813 = vst [vmem:[%s201_s7 + $0x18] sm:$0xff] %v695_v43  ;;  %v605_v45 = vcombine.low %v599_v42, %v601_v44 }
 0x1a6   : > { %811 = vst [vmem:[%s201_s7 + $0x10] sm:$0xff] %v605_v45 }
 0x1a7   : > { %962 = shalt.err (!%p959_p0)
}
 0x1a8   : > { %s963_s23 = scalar_lea.hbm %s1337_s27, 512  ;;  %s967_s29 = scalar_lea.hbm %s1383_s3, 1024 }
 0x1a9   : > { %p964_p5 = scmp.ne.s32.totalorder %s1337_s27, %s963_s23  ;;  %p968_p1 = scmp.lt.s32.totalorder %s1337_s27, %s1383_s3 }
 0x1aa   : > { %p969_p4 = scmp.lt.s32.totalorder %s967_s29, %s963_s23 }
 0x1ab   : > { %p965_p9 = pnand %p964_p5, %p1411_p3 }
 0x1ac   : > { %p970_p6 = por %p969_p4, %p968_p1 }
 0x1ad   : > { %p966_p12 = pneg %p965_p9 }
 0x1af   : > { %p971_p8 = pnand %p970_p6, %p966_p12 }
 0x1b1   : > { %974 = shalt.err (!%p971_p8)
}
 0x1b2   : > { %s1034_s8 = smov 128   ;;  %s1035_s7 = smov 8  }
 0x1b3   : > { %827 = dma.vmem_to_hbm [thread:$0]  (%p1411_p3), %s1332_s9, 512, %s1337_s27, %s700_s20, %s1034_s8, %s1034_s8, %s1035_s7  }
 0x1b4 PF: > { %s728_s10 = sand.u32 1, %s1005_s12   ;;  %p1412_p11 = scmp.ne.s32.totalorder %s1389_s19, 0 }
 0x1b5   : > { %p1413_p7 = scmp.ge.s32.totalorder %s1017_s15, 2  ;;  %s729_s21 = scalar_lea.sflag [#allocation4], %s728_s10 }
 0x1b7   : > { %p838_p10 = pnand %p1413_p7, %p1412_p11 }
 0x1b9   : > { %p839_p2 = pneg %p838_p10 }
 0x1bb   : > { %1000 = dma.done.wait (%p839_p2), %s729_s21, 512  }
 0x1bc   : > { %1002 = vsyncadd (%p839_p2), %s729_s21, 4294966784  ;;  %p17_p13 = scmp.ge.s32.totalorder %s1110_s24, 4   ;;  %s1414_s12 = smov %s1009_s13 }
 0x1bd   : > { %s1415_s13 = smov %s1013_s14  ;;  %s1416_s14 = smov %s1127_s5 }
 0x1be   : > { %s1417_s15 = smov %s1110_s24  ;;  %19 = sbr.rel (!%p17_p13) target bundleno = 6 (0x6), region = 87 }
 0x1c3   :  { %734 = vsyncpa [#allocation3], 1 }
 0x1c4   :  { %736 = vsyncpa [#allocation3 + $0x1], 1 }
 0x1c5   :  { %737 = vsyncpa [#allocation6], 1 }
 0x1c6   :  { %738 = vsyncpa [#allocation4], 1 }
 0x1c7   :  { %740 = vsyncpa [#allocation4 + $0x1], 1 }

</bundles_post_ra>
